<compile_context>
chip_gen: v6e
topology: v6e:2x2x1
jax: 0.10.0
libtpu: 0.0.40
codegen_flags: <defaults>
</compile_context>

<pallas_src>
import functools

import jax
import jax.numpy as jnp
from jax.experimental import pallas as pl
from jax.experimental.pallas import tpu as pltpu

HIDDEN = 32     # synthetic bert.config.hidden_size (real BERT-base is 768)
FFN = 64
SEQ = 8
VOCAB = 100
EPS = 1e-12
OUT_PAD = 128   # lane-dense logits slab; real logits are the first num_labels lanes

_VMEM = pl.BlockSpec(memory_space=pltpu.MemorySpace.VMEM)


def _layernorm(x, g, b):
    # two-pass (matches PyTorch LayerNorm; avoids E[x^2]-mu^2 cancellation)
    mu = jnp.mean(x, axis=-1, keepdims=True)
    xc = x - mu
    var = jnp.mean(xc * xc, axis=-1, keepdims=True)
    return xc * jax.lax.rsqrt(var + EPS) * g + b


# ---------------------------------------------------------------------------
# Single fused kernel: embeddings -> encoder -> pooler -> kw/loc -> head
# ---------------------------------------------------------------------------
def fused_multimodal_kernel(offs32, offs64, offs128,
                            ids_ref, mask_sel_ref, kw_ref, loc_ref,
                            s32_ref, s64_ref, s128_ref, out_ref):
    BS = ids_ref.shape[0]
    B = kw_ref.shape[0]
    f32 = jnp.float32

    def g32(name):
        r0, n = offs32[name]
        return s32_ref[r0:r0 + n, :]

    def g64(name):
        r0, n = offs64[name]
        return s64_ref[r0:r0 + n, :]

    def g128(name):
        r0, n = offs128[name]
        return s128_ref[r0:r0 + n, :]

    # --- embedding lookup as a one-hot MXU matmul ---------------------------
    iota_v = jax.lax.broadcasted_iota(jnp.int32, (BS, VOCAB), 1)
    onehot = (ids_ref[...] == iota_v).astype(f32)                     # (BS, VOCAB)
    emb = jnp.dot(onehot, g32('word_emb'), preferred_element_type=f32)
    emb = emb + g32('pos_bs')                                         # pre-tiled (BS, H)
    h = _layernorm(emb, g32('ln_e_g'), g32('ln_e_b'))                 # (BS, H)

    # --- single-head self-attention, one flat (BS, BS) score tile -----------
    # wq/bq already carry the 1/sqrt(H) scale (folded at prepare time).
    q = jnp.dot(h, g32('wq'), preferred_element_type=f32) + g32('bq')
    k = jnp.dot(h, g32('wk'), preferred_element_type=f32) + g32('bk')
    v = jnp.dot(h, g32('wv'), preferred_element_type=f32) + g32('bv')

    scores = jax.lax.dot_general(q, k, (((1,), (1,)), ((), ())),
                                 preferred_element_type=f32)          # (BS, BS)
    scores = scores + mask_sel_ref[0:BS, :]        # additive bias precomputed outside

    scores = scores - jnp.max(scores, axis=-1, keepdims=True)
    p = jnp.exp(scores)
    p = p * pl.reciprocal(jnp.sum(p, axis=-1, keepdims=True), approx=True)

    ctx = jnp.dot(p, v, preferred_element_type=f32)                   # (BS, H)
    attn = jnp.dot(ctx, g32('wo'), preferred_element_type=f32) + g32('bo')
    h = _layernorm(h + attn, g32('ln1_g'), g32('ln1_b'))

    # --- feed-forward --------------------------------------------------------
    # TODO(synk): HF BERT uses exact erf GELU; tanh approximation kept (EUP path).
    ff = jax.nn.gelu(
        jnp.dot(h, g64('w_ff1'), preferred_element_type=f32) + g64('b_ff1'),
        approximate=True)
    ff = jnp.dot(ff, g32('w_ff2'), preferred_element_type=f32) + g32('b_ff2')
    h = _layernorm(h + ff, g32('ln2_g'), g32('ln2_b'))                # (BS, H)

    # --- pooler: tanh(Linear(CLS)); CLS rows picked by a static sel matmul ---
    sel = mask_sel_ref[BS:BS + B, :]                                  # (B, BS)
    cls = jnp.dot(sel, h, preferred_element_type=f32)                 # (B, H)
    pooled = jnp.tanh(jnp.dot(cls, g32('wp'), preferred_element_type=f32) + g32('bp'))

    # --- keyword / location branches (location padded to 64 lanes) ----------
    kw = jnp.maximum(
        jnp.dot(kw_ref[...], g64('w_kw'), preferred_element_type=f32) + g64('b_kw'),
        0.0)                                                          # (B, 64)
    loc = jnp.maximum(
        jnp.dot(loc_ref[...], g64('w_loc'), preferred_element_type=f32) + g64('b_loc'),
        0.0)                                                          # (B, 64); lanes 16+ are 0

    # --- fusion head: concat replaced by per-branch matmuls summed ----------
    comb = (jnp.dot(pooled, g64('w_comb_p'), preferred_element_type=f32)
            + jnp.dot(kw, g64('w_comb_k'), preferred_element_type=f32)
            + jnp.dot(loc, g64('w_comb_l'), preferred_element_type=f32)
            + g64('b_comb'))
    comb = jnp.maximum(comb, 0.0)                                     # (B, 64)

    out_ref[...] = (jnp.dot(comb, g128('w_cls'), preferred_element_type=f32)
                    + g128('b_cls')).astype(out_ref.dtype)            # (B, OUT_PAD)


# ---------------------------------------------------------------------------
# Parameter init (deterministic, synthetic) + one-time kernel prep
# ---------------------------------------------------------------------------
def init_params(key, num_kw, num_loc, num_labels):
    ks = iter(jax.random.split(key, 32))

    def w(shape, scale=0.02):
        return scale * jax.random.normal(next(ks), shape, jnp.float32)

    H, F = HIDDEN, FFN
    return dict(
        word_emb=w((VOCAB, H)), pos_emb=w((SEQ, H)), type_emb=w((2, H)),
        ln_e_g=jnp.ones((1, H), jnp.float32), ln_e_b=jnp.zeros((1, H), jnp.float32),
        wq=w((H, H)), bq=jnp.zeros((1, H), jnp.float32),
        wk=w((H, H)), bk=jnp.zeros((1, H), jnp.float32),
        wv=w((H, H)), bv=jnp.zeros((1, H), jnp.float32),
        wo=w((H, H)), bo=jnp.zeros((1, H), jnp.float32),
        ln1_g=jnp.ones((1, H), jnp.float32), ln1_b=jnp.zeros((1, H), jnp.float32),
        w_ff1=w((H, F)), b_ff1=jnp.zeros((1, F), jnp.float32),
        w_ff2=w((F, H)), b_ff2=jnp.zeros((1, H), jnp.float32),
        ln2_g=jnp.ones((1, H), jnp.float32), ln2_b=jnp.zeros((1, H), jnp.float32),
        wp=w((H, H)), bp=jnp.zeros((1, H), jnp.float32),
        # multimodal head (same shapes as the PyTorch module, hidden=32)
        w_kw=w((num_kw, 64)), b_kw=jnp.zeros((1, 64), jnp.float32),
        w_loc=w((num_loc, 16)), b_loc=jnp.zeros((1, 16), jnp.float32),
        w_comb=w((HIDDEN + 64 + 16, 64)), b_comb=jnp.zeros((1, 64), jnp.float32),
        w_cls=w((64, num_labels)), b_cls=jnp.zeros((1, num_labels), jnp.float32),
    )


def _pack(entries, row_align=8):
    """Concatenate same-lane-width 2-D arrays along rows, padding each chunk to
    an 8-row boundary so in-kernel static slices stay sublane-aligned."""
    offs, chunks, row = {}, [], 0
    for name, a in entries:
        a = jnp.asarray(a, jnp.float32)
        n = int(a.shape[0])
        offs[name] = (row, n)
        pad = (-n) % row_align
        if pad:
            a = jnp.concatenate([a, jnp.zeros((pad, a.shape[1]), jnp.float32)], axis=0)
        chunks.append(a)
        row += n + pad
    return jnp.concatenate(chunks, axis=0), offs


def prepare_params(p, num_labels, batch_size):
    """One-time prep: fold attention scale, fold token-type-0 embedding into
    pre-tiled positions, split/pad W_comb by branch, pad classifier to 128
    lanes, and pack everything into three lane-width-grouped slabs."""
    assert num_labels <= OUT_PAD
    H = HIDDEN
    BS = batch_size * SEQ
    scale = 1.0 / jnp.sqrt(jnp.float32(H))

    # token_type_ids default to 0 in this forward signature -> fold type_emb[0].
    pos_bs = jnp.tile(p['pos_emb'] + p['type_emb'][0][None, :], (batch_size, 1))  # (BS, H)

    slab32, offs32 = _pack([
        ('word_emb', p['word_emb']),
        ('pos_bs', pos_bs),
        ('ln_e_g', p['ln_e_g']), ('ln_e_b', p['ln_e_b']),
        ('wq', p['wq'] * scale), ('bq', p['bq'] * scale),
        ('wk', p['wk']), ('bk', p['bk']),
        ('wv', p['wv']), ('bv', p['bv']),
        ('wo', p['wo']), ('bo', p['bo']),
        ('ln1_g', p['ln1_g']), ('ln1_b', p['ln1_b']),
        ('w_ff2', p['w_ff2']), ('b_ff2', p['b_ff2']),
        ('ln2_g', p['ln2_g']), ('ln2_b', p['ln2_b']),
        ('wp', p['wp']), ('bp', p['bp']),
    ])

    # location branch padded 16 -> 64 lanes; matching zero rows in the fused
    # w_comb slice keep the result numerically identical.
    num_loc = p['w_loc'].shape[0]
    w_loc64 = jnp.zeros((num_loc, 64), jnp.float32).at[:, :16].set(p['w_loc'])
    b_loc64 = jnp.zeros((1, 64), jnp.float32).at[:, :16].set(p['b_loc'])
    w_comb_l64 = jnp.zeros((64, 64), jnp.float32).at[:16, :].set(p['w_comb'][H + 64:, :])

    slab64, offs64 = _pack([
        ('w_ff1', p['w_ff1']), ('b_ff1', p['b_ff1']),
        ('w_kw', p['w_kw']), ('b_kw', p['b_kw']),
        ('w_loc', w_loc64), ('b_loc', b_loc64),
        ('w_comb_p', p['w_comb'][:H, :]),
        ('w_comb_k', p['w_comb'][H:H + 64, :]),
        ('w_comb_l', w_comb_l64),
        ('b_comb', p['b_comb']),
    ])

    w_cls = jnp.zeros((64, OUT_PAD), jnp.float32).at[:, :num_labels].set(p['w_cls'])
    b_cls = jnp.zeros((1, OUT_PAD), jnp.float32).at[:, :num_labels].set(p['b_cls'])
    slab128, offs128 = _pack([('w_cls', w_cls), ('b_cls', b_cls)])

    # Static pieces of the (BS+B, BS) mask/select kernel input:
    #   rows [0:BS)    -> block-diagonal same-batch mask (amask applied per call)
    #   rows [BS:BS+B) -> CLS-row selection one-hot (row b picks token b*SEQ)
    bidx = jnp.repeat(jnp.arange(batch_size), SEQ)
    same_batch = (bidx[:, None] == bidx[None, :]).astype(jnp.float32)      # (BS, BS)
    sel = jnp.zeros((batch_size, BS), jnp.float32).at[
        jnp.arange(batch_size), jnp.arange(batch_size) * SEQ].set(1.0)     # (B, BS)

    prep = dict(slab32=slab32, slab64=slab64, slab128=slab128,
                same_batch=same_batch, sel=sel)
    offsets = dict(offs32=offs32, offs64=offs64, offs128=offs128)   # static Python ints
    return prep, offsets


# ---------------------------------------------------------------------------
# Forward pass: one fused pallas_call (7 inputs: 4 activations + 3 weight slabs)
# ---------------------------------------------------------------------------
def multimodal_forward(prep, input_ids, attention_mask,
                       keyword_features, location_features,
                       *, offsets, num_labels):
    B, S = input_ids.shape
    BS = B * S
    ids2 = input_ids.reshape(BS, 1).astype(jnp.int32)

    # Additive attention bias: static block-diagonal mask * runtime key-padding
    # mask, packed together with the static CLS-selection rows into one input.
    key_valid = attention_mask.reshape(1, BS).astype(jnp.float32)
    attn_bias = (1.0 - prep['same_batch'] * key_valid) * (-1e9)            # (BS, BS)
    mask_sel = jnp.concatenate([attn_bias, prep['sel']], axis=0)           # (BS+B, BS)

    kernel = functools.partial(fused_multimodal_kernel,
                               offsets['offs32'], offsets['offs64'], offsets['offs128'])

    # TODO(synk): at real batch sizes, add a batch-block grid with
    # dimension_semantics=("parallel",) (use both v7x TensorCores) and constant
    # index_maps for the weight slabs so they stay VMEM-resident; store slabs in
    # bf16 on v6e/v7x and budget BERT-base scaling against v7x's 64 MiB VMEM.
    out = pl.pallas_call(
        kernel,
        out_shape=jax.ShapeDtypeStruct((B, OUT_PAD), jnp.float32),
        in_specs=[_VMEM] * 7,
        out_specs=_VMEM,
    )(ids2, mask_sel,
      keyword_features.astype(jnp.float32), location_features.astype(jnp.float32),
      prep['slab32'], prep['slab64'], prep['slab128'])
    return out[:, :num_labels]


if __name__ == "__main__":
    B = 2
    num_keyword_features = 8
    num_location_features = 4
    num_labels = 1

    key = jax.random.PRNGKey(0)
    k_ids, k_kw, k_loc, k_par = jax.random.split(key, 4)

    input_ids = jax.random.randint(k_ids, (B, SEQ), 0, VOCAB, dtype=jnp.int32)
    attention_mask = jnp.ones((B, SEQ), dtype=jnp.int32).at[1, 6:].set(0)
    keyword_features = jax.random.normal(k_kw, (B, num_keyword_features), jnp.float32)
    location_features = jax.random.normal(k_loc, (B, num_location_features), jnp.float32)

    params = init_params(k_par, num_keyword_features, num_location_features, num_labels)
    prep, offsets = prepare_params(params, num_labels, B)

    fwd = jax.jit(functools.partial(multimodal_forward,
                                    offsets=offsets, num_labels=num_labels))
    logits = fwd(prep, input_ids, attention_mask, keyword_features, location_features)
    jax.block_until_ready(logits)
    assert logits.shape == (B, num_labels), logits.shape
    print("KERNEL_OK")
</pallas_src>

<mosaic_0001>
module attributes {stable_mosaic.version = 11 : i64} {
  func.func @fused_multimodal_kernel(%arg0: memref<16x1xi32, #tpu.memory_space<vmem>>, %arg1: memref<18x16xf32, #tpu.memory_space<vmem>>, %arg2: memref<2x8xf32, #tpu.memory_space<vmem>>, %arg3: memref<2x4xf32, #tpu.memory_space<vmem>>, %arg4: memref<440x32xf32, #tpu.memory_space<vmem>>, %arg5: memref<240x64xf32, #tpu.memory_space<vmem>>, %arg6: memref<72x128xf32, #tpu.memory_space<vmem>>, %arg7: memref<2x128xf32, #tpu.memory_space<vmem>>) attributes {dimension_semantics = [], scalar_prefetch = 0 : i64, scratch_operands = 0 : i64, tpu.core_type = #tpu.core_type<tc>} {
    %0 = tpu.iota {dimensions = array<i32: 1>} : vector<16x100xi32>
    %c0 = arith.constant 0 : index
    %c0_0 = arith.constant 0 : index
    %1 = vector.load %arg0[%c0, %c0_0] : memref<16x1xi32, #tpu.memory_space<vmem>>, vector<16x1xi32>
    %2 = vector.broadcast %1 : vector<16x1xi32> to vector<16x100xi32>
    %3 = arith.cmpi eq, %2, %0 : vector<16x100xi32>
    %4 = arith.extui %3 : vector<16x100xi1> to vector<16x100xi32>
    %5 = arith.sitofp %4 : vector<16x100xi32> to vector<16x100xf32>
    %c0_1 = arith.constant 0 : index
    %c0_2 = arith.constant 0 : index
    %6 = vector.load %arg4[%c0_1, %c0_2] : memref<440x32xf32, #tpu.memory_space<vmem>>, vector<100x32xf32>
    %cst = arith.constant dense<0.000000e+00> : vector<16x32xf32>
    %7 = tpu.matmul %5, %6, %cst {dimension_numbers = #tpu.dot_dimension_numbers<[1], [0], [0], [1], [0, 0, 1, 1], [], []>} : vector<16x100xf32>, vector<100x32xf32>, vector<16x32xf32> -> vector<16x32xf32>
    %c104 = arith.constant 104 : index
    %c0_3 = arith.constant 0 : index
    %8 = vector.load %arg4[%c104, %c0_3] : memref<440x32xf32, #tpu.memory_space<vmem>>, vector<16x32xf32>
    %9 = arith.addf %7, %8 : vector<16x32xf32>
    %c120 = arith.constant 120 : index
    %c0_4 = arith.constant 0 : index
    %10 = vector.load %arg4[%c120, %c0_4] : memref<440x32xf32, #tpu.memory_space<vmem>>, vector<1x32xf32>
    %c128 = arith.constant 128 : index
    %c0_5 = arith.constant 0 : index
    %11 = vector.load %arg4[%c128, %c0_5] : memref<440x32xf32, #tpu.memory_space<vmem>>, vector<1x32xf32>
    %cst_6 = arith.constant dense<0.000000e+00> : vector<16xf32>
    %12 = vector.multi_reduction <add>, %9, %cst_6 [1] : vector<16x32xf32> to vector<16xf32>
    %13 = vector.shape_cast %12 : vector<16xf32> to vector<16x1xf32>
    %cst_7 = arith.constant 3.200000e+01 : f32
    %14 = vector.broadcast %cst_7 : f32 to vector<16x1xf32>
    %15 = arith.divf %13, %14 : vector<16x1xf32>
    %16 = vector.broadcast %15 : vector<16x1xf32> to vector<16x32xf32>
    %17 = arith.subf %9, %16 : vector<16x32xf32>
    %18 = arith.mulf %17, %17 : vector<16x32xf32>
    %cst_8 = arith.constant dense<0.000000e+00> : vector<16xf32>
    %19 = vector.multi_reduction <add>, %18, %cst_8 [1] : vector<16x32xf32> to vector<16xf32>
    %20 = vector.shape_cast %19 : vector<16xf32> to vector<16x1xf32>
    %cst_9 = arith.constant 3.200000e+01 : f32
    %21 = vector.broadcast %cst_9 : f32 to vector<16x1xf32>
    %22 = arith.divf %20, %21 : vector<16x1xf32>
    %cst_10 = arith.constant 9.99999996E-13 : f32
    %23 = vector.broadcast %cst_10 : f32 to vector<16x1xf32>
    %24 = arith.addf %22, %23 : vector<16x1xf32>
    %25 = math.rsqrt %24 : vector<16x1xf32>
    %26 = vector.broadcast %25 : vector<16x1xf32> to vector<16x32xf32>
    %27 = arith.mulf %17, %26 : vector<16x32xf32>
    %28 = vector.broadcast %10 : vector<1x32xf32> to vector<16x32xf32>
    %29 = arith.mulf %27, %28 : vector<16x32xf32>
    %30 = vector.broadcast %11 : vector<1x32xf32> to vector<16x32xf32>
    %31 = arith.addf %29, %30 : vector<16x32xf32>
    %c136 = arith.constant 136 : index
    %c0_11 = arith.constant 0 : index
    %32 = vector.load %arg4[%c136, %c0_11] : memref<440x32xf32, #tpu.memory_space<vmem>>, vector<32x32xf32>
    %cst_12 = arith.constant dense<0.000000e+00> : vector<16x32xf32>
    %33 = tpu.matmul %31, %32, %cst_12 {dimension_numbers = #tpu.dot_dimension_numbers<[1], [0], [0], [1], [0, 0, 1, 1], [], []>} : vector<16x32xf32>, vector<32x32xf32>, vector<16x32xf32> -> vector<16x32xf32>
    %c168 = arith.constant 168 : index
    %c0_13 = arith.constant 0 : index
    %34 = vector.load %arg4[%c168, %c0_13] : memref<440x32xf32, #tpu.memory_space<vmem>>, vector<1x32xf32>
    %35 = vector.broadcast %34 : vector<1x32xf32> to vector<16x32xf32>
    %36 = arith.addf %33, %35 : vector<16x32xf32>
    %c176 = arith.constant 176 : index
    %c0_14 = arith.constant 0 : index
    %37 = vector.load %arg4[%c176, %c0_14] : memref<440x32xf32, #tpu.memory_space<vmem>>, vector<32x32xf32>
    %cst_15 = arith.constant dense<0.000000e+00> : vector<16x32xf32>
    %38 = tpu.matmul %31, %37, %cst_15 {dimension_numbers = #tpu.dot_dimension_numbers<[1], [0], [0], [1], [0, 0, 1, 1], [], []>} : vector<16x32xf32>, vector<32x32xf32>, vector<16x32xf32> -> vector<16x32xf32>
    %c208 = arith.constant 208 : index
    %c0_16 = arith.constant 0 : index
    %39 = vector.load %arg4[%c208, %c0_16] : memref<440x32xf32, #tpu.memory_space<vmem>>, vector<1x32xf32>
    %40 = vector.broadcast %39 : vector<1x32xf32> to vector<16x32xf32>
    %41 = arith.addf %38, %40 : vector<16x32xf32>
    %c216 = arith.constant 216 : index
    %c0_17 = arith.constant 0 : index
    %42 = vector.load %arg4[%c216, %c0_17] : memref<440x32xf32, #tpu.memory_space<vmem>>, vector<32x32xf32>
    %cst_18 = arith.constant dense<0.000000e+00> : vector<16x32xf32>
    %43 = tpu.matmul %31, %42, %cst_18 {dimension_numbers = #tpu.dot_dimension_numbers<[1], [0], [0], [1], [0, 0, 1, 1], [], []>} : vector<16x32xf32>, vector<32x32xf32>, vector<16x32xf32> -> vector<16x32xf32>
    %c248 = arith.constant 248 : index
    %c0_19 = arith.constant 0 : index
    %44 = vector.load %arg4[%c248, %c0_19] : memref<440x32xf32, #tpu.memory_space<vmem>>, vector<1x32xf32>
    %45 = vector.broadcast %44 : vector<1x32xf32> to vector<16x32xf32>
    %46 = arith.addf %43, %45 : vector<16x32xf32>
    %cst_20 = arith.constant dense<0.000000e+00> : vector<16x16xf32>
    %47 = tpu.matmul %36, %41, %cst_20 {dimension_numbers = #tpu.dot_dimension_numbers<[1], [1], [0], [0], [0, 0, 1, 0], [], []>} : vector<16x32xf32>, vector<16x32xf32>, vector<16x16xf32> -> vector<16x16xf32>
    %c0_21 = arith.constant 0 : index
    %c0_22 = arith.constant 0 : index
    %48 = vector.load %arg1[%c0_21, %c0_22] : memref<18x16xf32, #tpu.memory_space<vmem>>, vector<16x16xf32>
    %49 = arith.addf %47, %48 : vector<16x16xf32>
    %cst_23 = arith.constant dense<0xFF800000> : vector<16xf32>
    %50 = vector.multi_reduction <maximumf>, %49, %cst_23 [1] : vector<16x16xf32> to vector<16xf32>
    %51 = vector.shape_cast %50 : vector<16xf32> to vector<16x1xf32>
    %52 = vector.broadcast %51 : vector<16x1xf32> to vector<16x16xf32>
    %53 = arith.subf %49, %52 : vector<16x16xf32>
    %54 = math.exp %53 : vector<16x16xf32>
    %cst_24 = arith.constant dense<0.000000e+00> : vector<16xf32>
    %55 = vector.multi_reduction <add>, %54, %cst_24 [1] : vector<16x16xf32> to vector<16xf32>
    %56 = vector.shape_cast %55 : vector<16xf32> to vector<16x1xf32>
    %57 = tpu.reciprocal %56 {approx = true} : vector<16x1xf32> -> vector<16x1xf32>
    %58 = vector.broadcast %57 : vector<16x1xf32> to vector<16x16xf32>
    %59 = arith.mulf %54, %58 : vector<16x16xf32>
    %cst_25 = arith.constant dense<0.000000e+00> : vector<16x32xf32>
    %60 = tpu.matmul %59, %46, %cst_25 {dimension_numbers = #tpu.dot_dimension_numbers<[1], [0], [0], [1], [0, 0, 1, 1], [], []>} : vector<16x16xf32>, vector<16x32xf32>, vector<16x32xf32> -> vector<16x32xf32>
    %c256 = arith.constant 256 : index
    %c0_26 = arith.constant 0 : index
    %61 = vector.load %arg4[%c256, %c0_26] : memref<440x32xf32, #tpu.memory_space<vmem>>, vector<32x32xf32>
    %cst_27 = arith.constant dense<0.000000e+00> : vector<16x32xf32>
    %62 = tpu.matmul %60, %61, %cst_27 {dimension_numbers = #tpu.dot_dimension_numbers<[1], [0], [0], [1], [0, 0, 1, 1], [], []>} : vector<16x32xf32>, vector<32x32xf32>, vector<16x32xf32> -> vector<16x32xf32>
    %c288 = arith.constant 288 : index
    %c0_28 = arith.constant 0 : index
    %63 = vector.load %arg4[%c288, %c0_28] : memref<440x32xf32, #tpu.memory_space<vmem>>, vector<1x32xf32>
    %64 = vector.broadcast %63 : vector<1x32xf32> to vector<16x32xf32>
    %65 = arith.addf %62, %64 : vector<16x32xf32>
    %66 = arith.addf %31, %65 : vector<16x32xf32>
    %c296 = arith.constant 296 : index
    %c0_29 = arith.constant 0 : index
    %67 = vector.load %arg4[%c296, %c0_29] : memref<440x32xf32, #tpu.memory_space<vmem>>, vector<1x32xf32>
    %c304 = arith.constant 304 : index
    %c0_30 = arith.constant 0 : index
    %68 = vector.load %arg4[%c304, %c0_30] : memref<440x32xf32, #tpu.memory_space<vmem>>, vector<1x32xf32>
    %cst_31 = arith.constant dense<0.000000e+00> : vector<16xf32>
    %69 = vector.multi_reduction <add>, %66, %cst_31 [1] : vector<16x32xf32> to vector<16xf32>
    %70 = vector.shape_cast %69 : vector<16xf32> to vector<16x1xf32>
    %cst_32 = arith.constant 3.200000e+01 : f32
    %71 = vector.broadcast %cst_32 : f32 to vector<16x1xf32>
    %72 = arith.divf %70, %71 : vector<16x1xf32>
    %73 = vector.broadcast %72 : vector<16x1xf32> to vector<16x32xf32>
    %74 = arith.subf %66, %73 : vector<16x32xf32>
    %75 = arith.mulf %74, %74 : vector<16x32xf32>
    %cst_33 = arith.constant dense<0.000000e+00> : vector<16xf32>
    %76 = vector.multi_reduction <add>, %75, %cst_33 [1] : vector<16x32xf32> to vector<16xf32>
    %77 = vector.shape_cast %76 : vector<16xf32> to vector<16x1xf32>
    %cst_34 = arith.constant 3.200000e+01 : f32
    %78 = vector.broadcast %cst_34 : f32 to vector<16x1xf32>
    %79 = arith.divf %77, %78 : vector<16x1xf32>
    %cst_35 = arith.constant 9.99999996E-13 : f32
    %80 = vector.broadcast %cst_35 : f32 to vector<16x1xf32>
    %81 = arith.addf %79, %80 : vector<16x1xf32>
    %82 = math.rsqrt %81 : vector<16x1xf32>
    %83 = vector.broadcast %82 : vector<16x1xf32> to vector<16x32xf32>
    %84 = arith.mulf %74, %83 : vector<16x32xf32>
    %85 = vector.broadcast %67 : vector<1x32xf32> to vector<16x32xf32>
    %86 = arith.mulf %84, %85 : vector<16x32xf32>
    %87 = vector.broadcast %68 : vector<1x32xf32> to vector<16x32xf32>
    %88 = arith.addf %86, %87 : vector<16x32xf32>
    %c0_36 = arith.constant 0 : index
    %c0_37 = arith.constant 0 : index
    %89 = vector.load %arg5[%c0_36, %c0_37] : memref<240x64xf32, #tpu.memory_space<vmem>>, vector<32x64xf32>
    %cst_38 = arith.constant dense<0.000000e+00> : vector<16x64xf32>
    %90 = tpu.matmul %88, %89, %cst_38 {dimension_numbers = #tpu.dot_dimension_numbers<[1], [0], [0], [1], [0, 0, 1, 1], [], []>} : vector<16x32xf32>, vector<32x64xf32>, vector<16x64xf32> -> vector<16x64xf32>
    %c32 = arith.constant 32 : index
    %c0_39 = arith.constant 0 : index
    %91 = vector.load %arg5[%c32, %c0_39] : memref<240x64xf32, #tpu.memory_space<vmem>>, vector<1x64xf32>
    %92 = vector.broadcast %91 : vector<1x64xf32> to vector<16x64xf32>
    %93 = arith.addf %90, %92 : vector<16x64xf32>
    %94 = arith.mulf %93, %93 : vector<16x64xf32>
    %95 = arith.mulf %93, %94 : vector<16x64xf32>
    %cst_40 = arith.constant 4.471500e-02 : f32
    %96 = vector.broadcast %cst_40 : f32 to vector<16x64xf32>
    %97 = arith.mulf %96, %95 : vector<16x64xf32>
    %98 = arith.addf %93, %97 : vector<16x64xf32>
    %cst_41 = arith.constant 0.797884583 : f32
    %99 = vector.broadcast %cst_41 : f32 to vector<16x64xf32>
    %100 = arith.mulf %99, %98 : vector<16x64xf32>
    %101 = math.tanh %100 : vector<16x64xf32>
    %cst_42 = arith.constant 1.000000e+00 : f32
    %102 = vector.broadcast %cst_42 : f32 to vector<16x64xf32>
    %103 = arith.addf %102, %101 : vector<16x64xf32>
    %cst_43 = arith.constant 5.000000e-01 : f32
    %104 = vector.broadcast %cst_43 : f32 to vector<16x64xf32>
    %105 = arith.mulf %104, %103 : vector<16x64xf32>
    %106 = arith.mulf %93, %105 : vector<16x64xf32>
    %c312 = arith.constant 312 : index
    %c0_44 = arith.constant 0 : index
    %107 = vector.load %arg4[%c312, %c0_44] : memref<440x32xf32, #tpu.memory_space<vmem>>, vector<64x32xf32>
    %cst_45 = arith.constant dense<0.000000e+00> : vector<16x32xf32>
    %108 = tpu.matmul %106, %107, %cst_45 {dimension_numbers = #tpu.dot_dimension_numbers<[1], [0], [0], [1], [0, 0, 1, 1], [], []>} : vector<16x64xf32>, vector<64x32xf32>, vector<16x32xf32> -> vector<16x32xf32>
    %c376 = arith.constant 376 : index
    %c0_46 = arith.constant 0 : index
    %109 = vector.load %arg4[%c376, %c0_46] : memref<440x32xf32, #tpu.memory_space<vmem>>, vector<1x32xf32>
    %110 = vector.broadcast %109 : vector<1x32xf32> to vector<16x32xf32>
    %111 = arith.addf %108, %110 : vector<16x32xf32>
    %112 = arith.addf %88, %111 : vector<16x32xf32>
    %c384 = arith.constant 384 : index
    %c0_47 = arith.constant 0 : index
    %113 = vector.load %arg4[%c384, %c0_47] : memref<440x32xf32, #tpu.memory_space<vmem>>, vector<1x32xf32>
    %c392 = arith.constant 392 : index
    %c0_48 = arith.constant 0 : index
    %114 = vector.load %arg4[%c392, %c0_48] : memref<440x32xf32, #tpu.memory_space<vmem>>, vector<1x32xf32>
    %cst_49 = arith.constant dense<0.000000e+00> : vector<16xf32>
    %115 = vector.multi_reduction <add>, %112, %cst_49 [1] : vector<16x32xf32> to vector<16xf32>
    %116 = vector.shape_cast %115 : vector<16xf32> to vector<16x1xf32>
    %cst_50 = arith.constant 3.200000e+01 : f32
    %117 = vector.broadcast %cst_50 : f32 to vector<16x1xf32>
    %118 = arith.divf %116, %117 : vector<16x1xf32>
    %119 = vector.broadcast %118 : vector<16x1xf32> to vector<16x32xf32>
    %120 = arith.subf %112, %119 : vector<16x32xf32>
    %121 = arith.mulf %120, %120 : vector<16x32xf32>
    %cst_51 = arith.constant dense<0.000000e+00> : vector<16xf32>
    %122 = vector.multi_reduction <add>, %121, %cst_51 [1] : vector<16x32xf32> to vector<16xf32>
    %123 = vector.shape_cast %122 : vector<16xf32> to vector<16x1xf32>
    %cst_52 = arith.constant 3.200000e+01 : f32
    %124 = vector.broadcast %cst_52 : f32 to vector<16x1xf32>
    %125 = arith.divf %123, %124 : vector<16x1xf32>
    %cst_53 = arith.constant 9.99999996E-13 : f32
    %126 = vector.broadcast %cst_53 : f32 to vector<16x1xf32>
    %127 = arith.addf %125, %126 : vector<16x1xf32>
    %128 = math.rsqrt %127 : vector<16x1xf32>
    %129 = vector.broadcast %128 : vector<16x1xf32> to vector<16x32xf32>
    %130 = arith.mulf %120, %129 : vector<16x32xf32>
    %131 = vector.broadcast %113 : vector<1x32xf32> to vector<16x32xf32>
    %132 = arith.mulf %130, %131 : vector<16x32xf32>
    %133 = vector.broadcast %114 : vector<1x32xf32> to vector<16x32xf32>
    %134 = arith.addf %132, %133 : vector<16x32xf32>
    %c16 = arith.constant 16 : index
    %c0_54 = arith.constant 0 : index
    %135 = vector.load %arg1[%c16, %c0_54] : memref<18x16xf32, #tpu.memory_space<vmem>>, vector<2x16xf32>
    %cst_55 = arith.constant dense<0.000000e+00> : vector<2x32xf32>
    %136 = tpu.matmul %135, %134, %cst_55 {dimension_numbers = #tpu.dot_dimension_numbers<[1], [0], [0], [1], [0, 0, 1, 1], [], []>} : vector<2x16xf32>, vector<16x32xf32>, vector<2x32xf32> -> vector<2x32xf32>
    %c400 = arith.constant 400 : index
    %c0_56 = arith.constant 0 : index
    %137 = vector.load %arg4[%c400, %c0_56] : memref<440x32xf32, #tpu.memory_space<vmem>>, vector<32x32xf32>
    %cst_57 = arith.constant dense<0.000000e+00> : vector<2x32xf32>
    %138 = tpu.matmul %136, %137, %cst_57 {dimension_numbers = #tpu.dot_dimension_numbers<[1], [0], [0], [1], [0, 0, 1, 1], [], []>} : vector<2x32xf32>, vector<32x32xf32>, vector<2x32xf32> -> vector<2x32xf32>
    %c432 = arith.constant 432 : index
    %c0_58 = arith.constant 0 : index
    %139 = vector.load %arg4[%c432, %c0_58] : memref<440x32xf32, #tpu.memory_space<vmem>>, vector<1x32xf32>
    %140 = vector.broadcast %139 : vector<1x32xf32> to vector<2x32xf32>
    %141 = arith.addf %138, %140 : vector<2x32xf32>
    %142 = math.tanh %141 : vector<2x32xf32>
    %c0_59 = arith.constant 0 : index
    %c0_60 = arith.constant 0 : index
    %143 = vector.load %arg2[%c0_59, %c0_60] : memref<2x8xf32, #tpu.memory_space<vmem>>, vector<2x8xf32>
    %c40 = arith.constant 40 : index
    %c0_61 = arith.constant 0 : index
    %144 = vector.load %arg5[%c40, %c0_61] : memref<240x64xf32, #tpu.memory_space<vmem>>, vector<8x64xf32>
    %cst_62 = arith.constant dense<0.000000e+00> : vector<2x64xf32>
    %145 = tpu.matmul %143, %144, %cst_62 {dimension_numbers = #tpu.dot_dimension_numbers<[1], [0], [0], [1], [0, 0, 1, 1], [], []>} : vector<2x8xf32>, vector<8x64xf32>, vector<2x64xf32> -> vector<2x64xf32>
    %c48 = arith.constant 48 : index
    %c0_63 = arith.constant 0 : index
    %146 = vector.load %arg5[%c48, %c0_63] : memref<240x64xf32, #tpu.memory_space<vmem>>, vector<1x64xf32>
    %147 = vector.broadcast %146 : vector<1x64xf32> to vector<2x64xf32>
    %148 = arith.addf %145, %147 : vector<2x64xf32>
    %cst_64 = arith.constant 0.000000e+00 : f32
    %149 = vector.broadcast %cst_64 : f32 to vector<2x64xf32>
    %150 = arith.maximumf %148, %149 : vector<2x64xf32>
    %c0_65 = arith.constant 0 : index
    %c0_66 = arith.constant 0 : index
    %151 = vector.load %arg3[%c0_65, %c0_66] : memref<2x4xf32, #tpu.memory_space<vmem>>, vector<2x4xf32>
    %c56 = arith.constant 56 : index
    %c0_67 = arith.constant 0 : index
    %152 = vector.load %arg5[%c56, %c0_67] : memref<240x64xf32, #tpu.memory_space<vmem>>, vector<4x64xf32>
    %cst_68 = arith.constant dense<0.000000e+00> : vector<2x64xf32>
    %153 = tpu.matmul %151, %152, %cst_68 {dimension_numbers = #tpu.dot_dimension_numbers<[1], [0], [0], [1], [0, 0, 1, 1], [], []>} : vector<2x4xf32>, vector<4x64xf32>, vector<2x64xf32> -> vector<2x64xf32>
    %c64 = arith.constant 64 : index
    %c0_69 = arith.constant 0 : index
    %154 = vector.load %arg5[%c64, %c0_69] : memref<240x64xf32, #tpu.memory_space<vmem>>, vector<1x64xf32>
    %155 = vector.broadcast %154 : vector<1x64xf32> to vector<2x64xf32>
    %156 = arith.addf %153, %155 : vector<2x64xf32>
    %cst_70 = arith.constant 0.000000e+00 : f32
    %157 = vector.broadcast %cst_70 : f32 to vector<2x64xf32>
    %158 = arith.maximumf %156, %157 : vector<2x64xf32>
    %c72 = arith.constant 72 : index
    %c0_71 = arith.constant 0 : index
    %159 = vector.load %arg5[%c72, %c0_71] : memref<240x64xf32, #tpu.memory_space<vmem>>, vector<32x64xf32>
    %cst_72 = arith.constant dense<0.000000e+00> : vector<2x64xf32>
    %160 = tpu.matmul %142, %159, %cst_72 {dimension_numbers = #tpu.dot_dimension_numbers<[1], [0], [0], [1], [0, 0, 1, 1], [], []>} : vector<2x32xf32>, vector<32x64xf32>, vector<2x64xf32> -> vector<2x64xf32>
    %c104_73 = arith.constant 104 : index
    %c0_74 = arith.constant 0 : index
    %161 = vector.load %arg5[%c104_73, %c0_74] : memref<240x64xf32, #tpu.memory_space<vmem>>, vector<64x64xf32>
    %cst_75 = arith.constant dense<0.000000e+00> : vector<2x64xf32>
    %162 = tpu.matmul %150, %161, %cst_75 {dimension_numbers = #tpu.dot_dimension_numbers<[1], [0], [0], [1], [0, 0, 1, 1], [], []>} : vector<2x64xf32>, vector<64x64xf32>, vector<2x64xf32> -> vector<2x64xf32>
    %163 = arith.addf %160, %162 : vector<2x64xf32>
    %c168_76 = arith.constant 168 : index
    %c0_77 = arith.constant 0 : index
    %164 = vector.load %arg5[%c168_76, %c0_77] : memref<240x64xf32, #tpu.memory_space<vmem>>, vector<64x64xf32>
    %cst_78 = arith.constant dense<0.000000e+00> : vector<2x64xf32>
    %165 = tpu.matmul %158, %164, %cst_78 {dimension_numbers = #tpu.dot_dimension_numbers<[1], [0], [0], [1], [0, 0, 1, 1], [], []>} : vector<2x64xf32>, vector<64x64xf32>, vector<2x64xf32> -> vector<2x64xf32>
    %166 = arith.addf %163, %165 : vector<2x64xf32>
    %c232 = arith.constant 232 : index
    %c0_79 = arith.constant 0 : index
    %167 = vector.load %arg5[%c232, %c0_79] : memref<240x64xf32, #tpu.memory_space<vmem>>, vector<1x64xf32>
    %168 = vector.broadcast %167 : vector<1x64xf32> to vector<2x64xf32>
    %169 = arith.addf %166, %168 : vector<2x64xf32>
    %cst_80 = arith.constant 0.000000e+00 : f32
    %170 = vector.broadcast %cst_80 : f32 to vector<2x64xf32>
    %171 = arith.maximumf %169, %170 : vector<2x64xf32>
    %c0_81 = arith.constant 0 : index
    %c0_82 = arith.constant 0 : index
    %172 = vector.load %arg6[%c0_81, %c0_82] : memref<72x128xf32, #tpu.memory_space<vmem>>, vector<64x128xf32>
    %cst_83 = arith.constant dense<0.000000e+00> : vector<2x128xf32>
    %173 = tpu.matmul %171, %172, %cst_83 {dimension_numbers = #tpu.dot_dimension_numbers<[1], [0], [0], [1], [0, 0, 1, 1], [], []>} : vector<2x64xf32>, vector<64x128xf32>, vector<2x128xf32> -> vector<2x128xf32>
    %c64_84 = arith.constant 64 : index
    %c0_85 = arith.constant 0 : index
    %174 = vector.load %arg6[%c64_84, %c0_85] : memref<72x128xf32, #tpu.memory_space<vmem>>, vector<1x128xf32>
    %175 = vector.broadcast %174 : vector<1x128xf32> to vector<2x128xf32>
    %176 = arith.addf %173, %175 : vector<2x128xf32>
    %c0_86 = arith.constant 0 : index
    %c0_87 = arith.constant 0 : index
    %177 = vector.load %arg7[%c0_86, %c0_87] : memref<2x128xf32, #tpu.memory_space<vmem>>, vector<2x128xf32>
    tpu.vector_store %arg7[%c0_86, %c0_87], %176 {strides = array<i32>} : memref<2x128xf32, #tpu.memory_space<vmem>>, vector<2x128xf32>,
    return
  }
}

</mosaic_0001>

<bundles_post_ra>
// kernel: multimodal_forward.1
= control target key start
LH: loop header
LB: loop body
LE: loop exit
PB: predicated region body
PF: predicated region fallthrough
CT: control target
= control target key end

     0   :  { %vm64_vm0 = vcmask 1043456   ;;  %v2074_v0 = vmov 0   ;;  %v26_v16 = vlaneseq  ;;  %vm57_vm1 = vcmask 818176   ;;  %s2538_s0 = inlined_call_operand.vmem [shape: s32[16,1], index: 0, kind: input, shape index: {}]   ;;  %s2539_s4 = inlined_call_operand.vmem [shape: f32[440,32], index: 4, kind: input, shape index: {}]   ;;  %s2540_s1 = inlined_call_operand.vmem [shape: f32[18,16], index: 1, kind: input, shape index: {}]   ;;  %s2541_s5 = inlined_call_operand.vmem [shape: f32[240,64], index: 5, kind: input, shape index: {}]   ;;  %s2542_s3 = inlined_call_operand.vmem [shape: f32[2,4], index: 3, kind: input, shape index: {}]   ;;  %s2543_s2 = inlined_call_operand.vmem [shape: f32[2,8], index: 2, kind: input, shape index: {}]   ;;  %s2544_s6 = inlined_call_operand.vmem [shape: f32[72,128], index: 6, kind: input, shape index: {}]   ;;  %s2545_s7 = inlined_call_operand.vmem [shape: f32[2,128], index: 7, kind: output, shape index: {}]  }
   0x1   :  { %2047 = vset.pattern.permute.xlu0 %v2074_v0  ;;  %v28_v1 = vld [vmem:[%s2538_s0] sm:$0xff]  ;;  %v53_v3 = vld [vmem:[%s2539_s4 + $0x58] sm:$0xff]  ;;  %v29_v4 = vld [vmem:[%s2538_s0 + $0x8] sm:$0xff]  ;;  %v2075_v19 = vmov 0.0   ;;  %vm145_vm4 = vcmask 261120   ;;  %vm532_vm5 = vcmask 130048  }
   0x2   :  { %v54_v2 = vld [vmem:[%s2539_s4 + $0x60] sm:$0xf]  ;;  %31 = vperm.xlu0 %2047, %v28_v1   ;;  %v52_v5 = vld [vmem:[%s2539_s4 + $0x50] sm:$0xff]  ;;  %v51_v6 = vld [vmem:[%s2539_s4 + $0x48] sm:$0xff]  ;;  %v27_v17 = vand.u32 127, %v26_v16  ;;  %vm889_vm6 = vcmask 523264  }
   0x3   :  { %1831 = vmatprep.subr.msk.mxu0 %vm64_vm0, %v54_v2  ;;  %v50_v7 = vld [vmem:[%s2539_s4 + $0x40] sm:$0xff]  ;;  %v49_v8 = vld [vmem:[%s2539_s4 + $0x38] sm:$0xff]  ;;  %v48_v9 = vld [vmem:[%s2539_s4 + $0x30] sm:$0xff]  ;;  %vm2076_vm7 = vmmov 0   ;;  %vm1259_vm8 = vcmask 31744   ;;  %vm1177_vm9 = vcmask 64512  }
   0x4   :  { %1832 = vmatpush3.msk.msra.mxu0 %vm64_vm0, %v54_v2  ;;  %v47_v10 = vld [vmem:[%s2539_s4 + $0x28] sm:$0xff]  ;;  %v46_v11 = vld [vmem:[%s2539_s4 + $0x20] sm:$0xff]  ;;  %v45_v12 = vld [vmem:[%s2539_s4 + $0x18] sm:$0xff] }
   0x5   :  { %1833 = vmatprep.subr.mxu0 %v53_v3  ;;  %v44_v13 = vld [vmem:[%s2539_s4 + $0x10] sm:$0xff]  ;;  %v43_v14 = vld [vmem:[%s2539_s4 + $0x8] sm:$0xff]  ;;  %v42_v15 = vld [vmem:[%s2539_s4] sm:$0xff] }
   0x6   :  { %1834 = vmatpush3.msra.mxu0 %v53_v3  ;;  %34 = vperm.xlu0 %2047, %v29_v4   ;;  %v55_v24 = vld [vmem:[%s2539_s4 + $0x68] sm:$0xff]  ;;  %v56_v25 = vld [vmem:[%s2539_s4 + $0x70] sm:$0xff]  ;;  %v188_v41 = vld [vmem:[%s2539_s4 + $0xa0] sm:$0xff] }
   0x7   :  { %1835 = vmatprep.subr.mxu0 %v52_v5  ;;  %v187_v42 = vld [vmem:[%s2539_s4 + $0x98] sm:$0xff]  ;;  %1860 = vmatprep.subr.mxu1 %v188_v41  ;;  %v186_v43 = vld [vmem:[%s2539_s4 + $0x90] sm:$0xff]  ;;  %v185_v44 = vld [vmem:[%s2539_s4 + $0x88] sm:$0xff] }
   0x8   :  { %1836 = vmatpush3.msra.mxu0 %v52_v5  ;;  %1861 = vmatpush3.msra.mxu1 %v188_v41  ;;  %v278_v45 = vld [vmem:[%s2539_s4 + $0xc8] sm:$0xff]  ;;  %v1680_v53 = vld [vmem:[%s2539_s4 + $0x78] ss:$0 sm:$0xff]  ;;  %v1681_v55 = vld [vmem:[%s2539_s4 + $0x80] ss:$0 sm:$0xff] }
   0x9   :  { %1837 = vmatprep.subr.mxu0 %v51_v6  ;;  %1862 = vmatprep.subr.mxu1 %v187_v42  ;;  %v277_v62 = vld [vmem:[%s2539_s4 + $0xc0] sm:$0xff]  ;;  %v276_v63 = vld [vmem:[%s2539_s4 + $0xb8] sm:$0xff]  ;;  %v275_v0 = vld [vmem:[%s2539_s4 + $0xb0] sm:$0xff] }
   0xa   :  { %1838 = vmatpush3.msra.mxu0 %v51_v6  ;;  %1863 = vmatpush3.msra.mxu1 %v187_v42  ;;  %v362_v1 = vld [vmem:[%s2539_s4 + $0xf0] sm:$0xff]  ;;  %v361_v2 = vld [vmem:[%s2539_s4 + $0xe8] sm:$0xff]  ;;  %v360_v3 = vld [vmem:[%s2539_s4 + $0xe0] sm:$0xff] }
   0xb   :  { %1839 = vmatprep.subr.mxu0 %v50_v7  ;;  %1864 = vmatprep.subr.mxu1 %v186_v43  ;;  %v359_v4 = vld [vmem:[%s2539_s4 + $0xd8] sm:$0xff]  ;;  %v1682_v6 = vld [vmem:[%s2539_s4 + $0xa8] ss:$0 sm:$0xff] }
   0xc   :  { %1840 = vmatpush3.msra.mxu0 %v50_v7  ;;  %1865 = vmatpush3.msra.mxu1 %v186_v43 }
   0xd   :  { %1841 = vmatprep.subr.mxu0 %v49_v8  ;;  %1866 = vmatprep.subr.mxu1 %v185_v44 }
   0xe   :  { %1842 = vmatpush3.msra.mxu0 %v49_v8  ;;  %1867 = vmatpush3.msra.mxu1 %v185_v44 }
   0xf   :  { %1843 = vmatprep.subr.mxu0 %v48_v9  ;;  %1871 = vmatprep.subr.mxu1 %v278_v45 }
  0x10   :  { %1844 = vmatpush3.msra.mxu0 %v48_v9  ;;  %v1685_v9 = vld [vmem:[%s2539_s4 + $0xd0] ss:$0 sm:$0xff] }
  0x11   :  { %1845 = vmatprep.subr.mxu0 %v47_v10 }
  0x12   :  { %1846 = vmatpush3.msra.mxu0 %v47_v10 }
  0x13   :  { %1847 = vmatprep.subr.mxu0 %v46_v11 }
  0x14   :  { %1848 = vmatpush3.msra.mxu0 %v46_v11 }
  0x15   :  { %1849 = vmatprep.subr.mxu0 %v45_v12 }
  0x16   :  { %1850 = vmatpush3.msra.mxu0 %v45_v12 }
  0x17   :  { %1851 = vmatprep.subr.mxu0 %v44_v13 }
  0x18   :  { %1852 = vmatpush3.msra.mxu0 %v44_v13 }
  0x19   :  { %1853 = vmatprep.subr.mxu0 %v43_v14 }
  0x1a   :  { %1854 = vmatpush3.msra.mxu0 %v43_v14  ;;  %v1688_v14 = vld [vmem:[%s2539_s4 + $0xf8] ss:$0 sm:$0xff] }
  0x1b   :  { %1855 = vmatprep.subr.mxu0 %v42_v15 }
  0x1c   :  { %1856 = vmatpush3.msra.mxu0 %v42_v15 }
  0x7d   :  { %v32_v18 = vpop.permute.xlu0 %31 }
  0x7e   :  { %vm36_vm2 = vcmp.eq.s32.totalorder %v32_v18, %v27_v17 }
  0x7f   :  { %v1675_v20 = vsel %vm36_vm2, 1.0, %v2075_v19 }
  0x80   :  { %1857 = vmatprep.mubr.msk.f32.mxu0 %vm57_vm1, %v1675_v20 }
  0x81   :  { %v35_v21 = vpop.permute.xlu0 %34 }
  0x82   :  { %vm37_vm3 = vcmp.eq.s32.totalorder %v35_v21, %v27_v17 }
  0x83   :  { %v1676_v22 = vsel %vm37_vm3, 1.0, %v2075_v19 }
  0x84   :  { %1858 = vmatmul.mubr.msk.f32.vlgmr.msra.gmra.mxu0 %vm57_vm1, %v1676_v22  ;;  %v443_v22 = vld [vmem:[%s2540_s1] sm:$0xff] }
 0x144   :  { %v1859_v23 = vpop.f32.mrf.mxu0 }
 0x145   :  { %v140_v28 = vadd.f32 %v1859_v23, %v56_v25  ;;  %v444_v23 = vld [vmem:[%s2540_s1 + $0x8] sm:$0xff] }
 0x146   :  { %v134_v26 = vpop.f32.mrf.mxu0 }
 0x147   :  { %v135_v27 = vadd.f32 %v134_v26, %v55_v24  ;;  %v149_v30 = vsel %vm145_vm4, %v140_v28, 0.0 }
 0x149   :  { %v146_v29 = vsel %vm145_vm4, %v135_v27, 0.0 }
 0x14a   :  { %147 = vadd.xlane.f32.xlu1 %v146_v29 }
 0x14e   :  { %150 = vadd.xlane.f32.xlu1 %v149_v30 }
 0x1d3   :  { %v148_v31 = vpop.xlane.xlu1 %147 }
 0x1d4   :  { %v153_v32 = vmul.f32 0.03125, %v148_v31 }
 0x1d6   :  { %v155_v33 = vsub.f32 %v135_v27, %v153_v32 }
 0x1d7   :  { %v151_v34 = vpop.xlane.xlu1 %150 }
 0x1d8   :  { %v154_v35 = vmul.f32 0.03125, %v151_v34  ;;  %v157_v36 = vmul.f32 %v155_v33, %v155_v33 }
 0x1da   :  { %v156_v37 = vsub.f32 %v140_v28, %v154_v35  ;;  %v159_v38 = vsel %vm145_vm4, %v157_v36, 0.0 }
 0x1db   :  { %160 = vadd.xlane.f32.xlu0 %v159_v38 }
 0x1dc   :  { %v158_v39 = vmul.f32 %v156_v37, %v156_v37 }
 0x1de   :  { %v162_v40 = vsel %vm145_vm4, %v158_v39, 0.0  ;;  %v639_v39 = vld [vmem:[%s2539_s4 + $0x118] sm:$0xff] }
 0x1df   :  { %163 = vadd.xlane.f32.xlu1 %v162_v40 }
 0x264   :  { %v161_v46 = vpop.xlane.xlu0 %160 }
 0x265   :  { %v165_v47 = vmul.f32 0.03125, %v161_v46  ;;  %v638_v46 = vld [vmem:[%s2539_s4 + $0x110] sm:$0xff] }
 0x267   :  { %v167_v48 = vadd.f32 1e-12, %v165_v47  ;;  %v637_v47 = vld [vmem:[%s2539_s4 + $0x108] sm:$0xff] }
 0x268   :  { %v164_v49 = vpop.xlane.xlu1 %163 }
 0x269   :  { %2048 = vrsqrt.f32 %v167_v48  ;;  %v166_v50 = vmul.f32 0.03125, %v164_v49  ;;  %v636_v48 = vld [vmem:[%s2539_s4 + $0x100] sm:$0xff] }
 0x26b   :  { %v168_v51 = vadd.f32 1e-12, %v166_v50 }
 0x26d   :  { %2050 = vrsqrt.f32 %v168_v51 }
 0x276   :  { %v2049_v52 = vpop.eup %2048 }
 0x277   :  { %v171_v54 = vmul.f32 %v2049_v52, %v155_v33  ;;  %v1697_v52 = vld [vmem:[%s2539_s4 + $0x120] ss:$0 sm:$0xff] }
 0x279   :  { %v177_v56 = vmul.f32 %v1680_v53, %v171_v54 }
 0x27a   :  { %v2051_v57 = vpop.eup %2050 }
 0x27b   :  { %v2197_v58 = vadd.f32 %v1681_v55, %v177_v56  ;;  %v172_v59 = vmul.f32 %v2051_v57, %v156_v37 }
 0x27d   :  { %1868 = vmatprep.mubr.msk.f32.mxu1 %vm145_vm4, %v2197_v58  ;;  %v178_v60 = vmul.f32 %v1680_v53, %v172_v59 }
 0x27f   :  { %v2201_v61 = vadd.f32 %v1681_v55, %v178_v60 }
 0x281   :  { %1869 = vmatmul.mubr.msk.f32.vlgmr.msra.gmra.mxu1 %vm145_vm4, %v2201_v61 }
 0x282   :  { %1872 = vmatpush3.msra.mxu1 %v278_v45  ;;  %1879 = vmatprep.mubr.msk.f32.mxu1 %vm145_vm4, %v2197_v58 }
 0x283   :  { %1873 = vmatprep.subr.mxu1 %v277_v62 }
 0x284   :  { %1874 = vmatpush3.msra.mxu1 %v277_v62 }
 0x285   :  { %1875 = vmatprep.subr.mxu1 %v276_v63 }
 0x286   :  { %1876 = vmatpush3.msra.mxu1 %v276_v63 }
 0x287   :  { %1877 = vmatprep.subr.mxu1 %v275_v0 }
 0x288   :  { %1878 = vmatpush3.msra.mxu1 %v275_v0 }
 0x289   :  { %1880 = vmatmul.mubr.msk.f32.vlgmr.msra.gmra.mxu1 %vm145_vm4, %v2201_v61  ;;  %1882 = vmatprep.subr.mxu1 %v362_v1 }
 0x28a   :  { %1883 = vmatpush3.msra.mxu1 %v362_v1  ;;  %1890 = vmatprep.mubr.msk.f32.mxu1 %vm145_vm4, %v2197_v58 }
 0x28b   :  { %1884 = vmatprep.subr.mxu1 %v361_v2 }
 0x28c   :  { %1885 = vmatpush3.msra.mxu1 %v361_v2 }
 0x28d   :  { %1886 = vmatprep.subr.mxu1 %v360_v3 }
 0x28e   :  { %1887 = vmatpush3.msra.mxu1 %v360_v3 }
 0x28f   :  { %1888 = vmatprep.subr.mxu1 %v359_v4 }
 0x290   :  { %1889 = vmatpush3.msra.mxu1 %v359_v4 }
 0x291   :  { %1891 = vmatmul.mubr.msk.f32.vlgmr.msra.gmra.mxu1 %vm145_vm4, %v2201_v61 }
 0x341   :  { %v1870_v5 = vpop.f32.mrf.mxu1 }
 0x342   :  { %v272_v16 = vadd.f32 %v1870_v5, %v1682_v6 }
 0x343   :  { %v266_v7 = vpop.f32.mrf.mxu1 }
 0x344   :  { %v267_v8 = vadd.f32 %v1682_v6, %v266_v7  ;;  %v770_v7 = vld [vmem:[%s2541_s5 + $0x10] sm:$0xff] }
 0x346   :  { %1897 = vmatprep.mubr.msk.f32.mxu1 %vm145_vm4, %v267_v8  ;;  %v769_v8 = vld [vmem:[%s2541_s5 + $0x8] sm:$0xff] }
 0x349   :  { %v1881_v10 = vpop.f32.mrf.mxu1 }
 0x34a   :  { %v356_v11 = vadd.f32 %v1881_v10, %v1685_v9 }
 0x34b   :  { %v350_v12 = vpop.f32.mrf.mxu1 }
 0x34c   :  { %v351_v13 = vadd.f32 %v1685_v9, %v350_v12  ;;  %1893 = vmatprep.subr.msk.mxu1 %vm145_vm4, %v356_v11  ;;  %v768_v9 = vld [vmem:[%s2541_s5] sm:$0xff] }
 0x34d   :  { %1894 = vmatpush3.xpose.msk.msra.mxu1 %vm145_vm4, %v356_v11 }
 0x34e   :  { %1895 = vmatprep.subr.msk.mxu1 %vm145_vm4, %v351_v13 }
 0x351   :  { %v1892_v15 = vpop.f32.mrf.mxu1  ;;  %1896 = vmatpush3.xpose.msk.msra.mxu1 %vm145_vm4, %v351_v13 }
 0x352   :  { %v440_v17 = vadd.f32 %v1892_v15, %v1688_v14 }
 0x353   :  { %v434_v18 = vpop.f32.mrf.mxu1 }
 0x354   :  { %v435_v20 = vadd.f32 %v1688_v14, %v434_v18  ;;  %1898 = vmatmul.mubr.msk.f32.vlgmr.msra.gmra.mxu1 %vm145_vm4, %v272_v16  ;;  %1900 = vmatprep.subr.mxu0 %v440_v17 }
 0x355   :  { %1901 = vmatpush3.msra.mxu0 %v440_v17  ;;  %v1700_v17 = vld [vmem:[%s2539_s4 + $0x128] ss:$0 sm:$0xff] }
 0x356   :  { %1902 = vmatprep.subr.mxu0 %v435_v20 }
 0x357   :  { %1903 = vmatpush3.msra.mxu0 %v435_v20  ;;  %v1701_v20 = vld [vmem:[%s2539_s4 + $0x130] ss:$0 sm:$0xff] }
 0x358   :  { %1907 = vmatprep.subr.mxu0 %v639_v39 }
 0x414   :  { %v1899_v21 = vpop.f32.mrf.mxu1 }
 0x415   :  { %v529_v26 = vadd.f32 %v1899_v21, %v444_v23 }
 0x416   :  { %v523_v24 = vpop.f32.mrf.mxu1 }
 0x417   :  { %v524_v25 = vadd.f32 %v523_v24, %v443_v22  ;;  %v536_v28 = vsel %vm532_vm5, %v529_v26, -inf }
 0x419   :  { %v533_v27 = vsel %vm532_vm5, %v524_v25, -inf }
 0x41a   :  { %534 = vmax.xlane.f32.xlu1 %v533_v27  ;;  %v883_v27 = vld [vmem:[%s2539_s4 + $0x170] sm:$0xff] }
 0x41e   :  { %537 = vmax.xlane.f32.xlu1 %v536_v28  ;;  %v882_v28 = vld [vmem:[%s2539_s4 + $0x168] sm:$0xff] }
 0x4a3   :  { %v535_v29 = vpop.xlane.xlu1 %534 }
 0x4a4   :  { %v539_v30 = vsub.f32 %v524_v25, %v535_v29  ;;  %v881_v29 = vld [vmem:[%s2539_s4 + $0x160] sm:$0xff] }
 0x4a6   :  { %v541_v31 = vmul.f32 1.442695, %v539_v30  ;;  %v880_v30 = vld [vmem:[%s2539_s4 + $0x158] sm:$0xff] }
 0x4a7   :  { %v538_v32 = vpop.xlane.xlu1 %537 }
 0x4a8   :  { %2052 = vpow2.f32 %v541_v31  ;;  %v540_v33 = vsub.f32 %v529_v26, %v538_v32  ;;  %v879_v31 = vld [vmem:[%s2539_s4 + $0x150] sm:$0xff]  ;;  %v878_v32 = vld [vmem:[%s2539_s4 + $0x148] sm:$0xff] }
 0x4aa   :  { %v543_v34 = vmul.f32 1.442695, %v540_v33  ;;  %v877_v33 = vld [vmem:[%s2539_s4 + $0x140] sm:$0xff] }
 0x4ac   :  { %2054 = vpow2.f32 %v543_v34  ;;  %v876_v34 = vld [vmem:[%s2539_s4 + $0x138] sm:$0xff] }
 0x4b5   :  { %v2053_v35 = vpop.eup %2052 }
 0x4b6   :  { %v545_v36 = vsel %vm532_vm5, %v2053_v35, 0.0 }
 0x4b7   :  { %546 = vadd.xlane.f32.xlu1 %v545_v36 }
 0x4b9   :  { %v2055_v37 = vpop.eup %2054 }
 0x4ba   :  { %v548_v38 = vsel %vm532_vm5, %v2055_v37, 0.0 }
 0x4bb   :  { %549 = vadd.xlane.f32.xlu1 %v548_v38 }
 0x540   :  { %v547_v40 = vpop.xlane.xlu1 %546 }
 0x541   :  { %2056 = vrcp.f32 %v547_v40 }
 0x544   :  { %v550_v41 = vpop.xlane.xlu1 %549 }
 0x545   :  { %2058 = vrcp.f32 %v550_v41 }
 0x54e   :  { %v2057_v42 = vpop.eup %2056 }
 0x54f   :  { %v553_v43 = vmul.f32 %v2057_v42, %v2053_v35  ;;  %v1702_v35 = vld [vmem:[%s2541_s5 + $0x20] ss:$0 sm:$0xff] }
 0x551   :  { %1904 = vmatprep.mubr.msk.f32.mxu0 %vm532_vm5, %v553_v43 }
 0x552   :  { %v2059_v44 = vpop.eup %2058 }
 0x553   :  { %v554_v45 = vmul.f32 %v2059_v44, %v2055_v37 }
 0x555   :  { %1905 = vmatmul.mubr.msk.f32.vlgmr.msra.gmra.mxu0 %vm532_vm5, %v554_v45 }
 0x556   :  { %1908 = vmatpush3.msra.mxu0 %v639_v39 }
 0x557   :  { %1909 = vmatprep.subr.mxu0 %v638_v46 }
 0x558   :  { %1910 = vmatpush3.msra.mxu0 %v638_v46 }
 0x559   :  { %1911 = vmatprep.subr.mxu0 %v637_v47 }
 0x55a   :  { %1912 = vmatpush3.msra.mxu0 %v637_v47 }
 0x55b   :  { %1913 = vmatprep.subr.mxu0 %v636_v48 }
 0x55c   :  { %1914 = vmatpush3.msra.mxu0 %v636_v48 }
 0x55d   :  { %1929 = vmatprep.subr.mxu0 %v883_v27 }
 0x615   :  { %v1906_v49 = vpop.f32.mrf.mxu0 }
 0x617   :  { %v627_v50 = vpop.f32.mrf.mxu0 }
 0x618   :  { %1915 = vmatprep.mubr.msk.f32.mxu0 %vm145_vm4, %v627_v50 }
 0x619   :  { %1916 = vmatmul.mubr.msk.f32.vlgmr.msra.gmra.mxu0 %vm145_vm4, %v1906_v49 }
 0x61a   :  { %1930 = vmatpush3.msra.mxu0 %v883_v27  ;;  %v1709_v27 = vld [vmem:[%s2539_s4 + $0x188] ss:$0 sm:$0xff] }
 0x61b   :  { %1931 = vmatprep.subr.mxu0 %v882_v28 }
 0x61c   :  { %1932 = vmatpush3.msra.mxu0 %v882_v28 }
 0x61d   :  { %1933 = vmatprep.subr.mxu0 %v881_v29 }
 0x61e   :  { %1934 = vmatpush3.msra.mxu0 %v881_v29 }
 0x61f   :  { %1935 = vmatprep.subr.mxu0 %v880_v30 }
 0x620   :  { %1936 = vmatpush3.msra.mxu0 %v880_v30 }
 0x621   :  { %1937 = vmatprep.subr.mxu0 %v879_v31 }
 0x622   :  { %1938 = vmatpush3.msra.mxu0 %v879_v31 }
 0x623   :  { %1939 = vmatprep.subr.mxu0 %v878_v32 }
 0x624   :  { %1940 = vmatpush3.msra.mxu0 %v878_v32 }
 0x625   :  { %1941 = vmatprep.subr.mxu0 %v877_v33 }
 0x626   :  { %1942 = vmatpush3.msra.mxu0 %v877_v33  ;;  %v1013_v33 = vld [vmem:[%s2540_s1 + $0x10] sm:$0x3] }
 0x627   :  { %1943 = vmatprep.subr.mxu0 %v876_v34 }
 0x628   :  { %1944 = vmatpush3.msra.mxu0 %v876_v34  ;;  %v1087_v34 = vld [vmem:[%s2539_s4 + $0x190] sm:$0xff] }
 0x629   :  { %1948 = vmatprep.subr.mxu0 %v2075_v19 }
 0x6d9   :  { %v1917_v51 = vpop.f32.mrf.mxu0 }
 0x6da   :  { %v723_v54 = vadd.f32 %v1917_v51, %v1697_v52 }
 0x6db   :  { %v717_v53 = vpop.f32.mrf.mxu0 }
 0x6dc   :  { %v718_v55 = vadd.f32 %v1697_v52, %v717_v53  ;;  %v727_v59 = vadd.f32 %v723_v54, %v2201_v61  ;;  %v771_v61 = vld [vmem:[%s2541_s5 + $0x18] sm:$0xff] }
 0x6dd   :  { %1918 = vmatprep.subr.mxu1 %v771_v61 }
 0x6de   :  { %v726_v56 = vadd.f32 %v718_v55, %v2197_v58  ;;  %v733_v60 = vsel %vm145_vm4, %v727_v59, 0.0  ;;  %1919 = vmatpush3.msra.mxu1 %v771_v61 }
 0x6df   :  { %1920 = vmatprep.subr.mxu1 %v770_v7 }
 0x6e0   :  { %v730_v57 = vsel %vm145_vm4, %v726_v56, 0.0  ;;  %1921 = vmatpush3.msra.mxu1 %v770_v7 }
 0x6e1   :  { %731 = vadd.xlane.f32.xlu1 %v730_v57  ;;  %1922 = vmatprep.subr.mxu1 %v769_v8 }
 0x6e2   :  { %1923 = vmatpush3.msra.mxu1 %v769_v8 }
 0x6e3   :  { %1924 = vmatprep.subr.mxu1 %v768_v9 }
 0x6e4   :  { %1925 = vmatpush3.msra.mxu1 %v768_v9 }
 0x6e5   :  { %734 = vadd.xlane.f32.xlu1 %v733_v60  ;;  %1955 = vmatprep.subr.mxu1 %v2075_v19 }
 0x76a   :  { %v732_v62 = vpop.xlane.xlu1 %731 }
 0x76b   :  { %v736_v63 = vmul.f32 0.03125, %v732_v62 }
 0x76d   :  { %v738_v0 = vsub.f32 %v726_v56, %v736_v63 }
 0x76e   :  { %v735_v1 = vpop.xlane.xlu1 %734 }
 0x76f   :  { %v737_v2 = vmul.f32 0.03125, %v735_v1  ;;  %v740_v3 = vmul.f32 %v738_v0, %v738_v0 }
 0x771   :  { %v739_v4 = vsub.f32 %v727_v59, %v737_v2  ;;  %v742_v5 = vsel %vm145_vm4, %v740_v3, 0.0  ;;  %v1705_v59 = vld [vmem:[%s2539_s4 + $0x178] ss:$0 sm:$0xff] }
 0x772   :  { %743 = vadd.xlane.f32.xlu1 %v742_v5 }
 0x773   :  { %v741_v6 = vmul.f32 %v739_v4, %v739_v4 }
 0x775   :  { %v745_v58 = vsel %vm145_vm4, %v741_v6, 0.0 }
 0x776   :  { %746 = vadd.xlane.f32.xlu0 %v745_v58 }
 0x7fb   :  { %v744_v10 = vpop.xlane.xlu1 %743 }
 0x7fc   :  { %v748_v11 = vmul.f32 0.03125, %v744_v10 }
 0x7fe   :  { %v750_v12 = vadd.f32 1e-12, %v748_v11 }
 0x7ff   :  { %v747_v13 = vpop.xlane.xlu0 %746 }
 0x800   :  { %2060 = vrsqrt.f32 %v750_v12  ;;  %v749_v14 = vmul.f32 0.03125, %v747_v13  ;;  %v1090_v13 = vld [vmem:[%s2539_s4 + $0x1a8] sm:$0xff] }
 0x802   :  { %v751_v15 = vadd.f32 1e-12, %v749_v14  ;;  %v1089_v14 = vld [vmem:[%s2539_s4 + $0x1a0] sm:$0xff] }
 0x804   :  { %2062 = vrsqrt.f32 %v751_v15  ;;  %v1088_v15 = vld [vmem:[%s2539_s4 + $0x198] sm:$0xff] }
 0x80d   :  { %v2061_v16 = vpop.eup %2060 }
 0x80e   :  { %v754_v18 = vmul.f32 %v2061_v16, %v738_v0 }
 0x810   :  { %v760_v21 = vmul.f32 %v1700_v17, %v754_v18 }
 0x811   :  { %v2063_v22 = vpop.eup %2062 }
 0x812   :  { %v755_v23 = vmul.f32 %v2063_v22, %v739_v4  ;;  %v2303_v24 = vadd.f32 %v1701_v20, %v760_v21 }
 0x814   :  { %v761_v25 = vmul.f32 %v1700_v17, %v755_v23  ;;  %1926 = vmatprep.mubr.msk.f32.mxu1 %vm145_vm4, %v2303_v24 }
 0x816   :  { %v767_v26 = vadd.f32 %v1701_v20, %v761_v25 }
 0x818   :  { %1927 = vmatmul.mubr.msk.f32.vlgmr.msra.gmra.mxu1 %vm145_vm4, %v767_v26 }
 0x819   :  { %1963 = vmatprep.mubr.msk.f32.mxu1 %vm2076_vm7, %v2075_v19  ;;  %1956 = vmatpush3.msra.mxu1 %v1090_v13  ;;  %v1590_v13 = vld [vmem:[%s2544_s6 + $0x30] sm:$0xff] }
 0x81a   :  { %1957 = vmatprep.subr.mxu1 %v2075_v19 }
 0x81b   :  { %1958 = vmatpush3.msra.mxu1 %v1089_v14  ;;  %v1589_v14 = vld [vmem:[%s2544_s6 + $0x28] sm:$0xff] }
 0x81c   :  { %1959 = vmatprep.subr.mxu1 %v2075_v19 }
 0x81d   :  { %1960 = vmatpush3.msra.mxu1 %v1088_v15  ;;  %v1588_v15 = vld [vmem:[%s2544_s6 + $0x20] sm:$0xff] }
 0x81e   :  { %1961 = vmatprep.subr.mxu1 %v2075_v19 }
 0x81f   :  { %1962 = vmatpush3.msra.mxu1 %v1087_v34 }
 0x820   :  { %1966 = vmatprep.subr.mxu1 %v2075_v19 }
 0x8d8   :  { %v1928_v36 = vpop.f32.mrf.mxu1 }
 0x8d9   :  { %v855_v37 = vadd.f32 %v1928_v36, %v1702_v35  ;;  %v1252_v36 = vld [vmem:[%s2542_s3] sm:$0x3] }
 0x8da   :  { %v849_v38 = vpop.f32.mrf.mxu1 }
 0x8db   :  { %v859_v39 = vmul.f32 %v855_v37, %v855_v37  ;;  %v850_v40 = vadd.f32 %v1702_v35, %v849_v38  ;;  %v1253_v35 = vld [vmem:[%s2541_s5 + $0x38] sm:$0xf] }
 0x8dd   :  { %v861_v41 = vmul.f32 %v859_v39, %v855_v37  ;;  %v858_v42 = vmul.f32 %v850_v40, %v850_v40 }
 0x8df   :  { %v863_v43 = vmul.f32 0.044715, %v861_v41  ;;  %v860_v44 = vmul.f32 %v858_v42, %v850_v40  ;;  %v1348_v41 = vld [vmem:[%s2541_s5 + $0xa0] sm:$0xff]  ;;  %v1347_v42 = vld [vmem:[%s2541_s5 + $0x98] sm:$0xff] }
 0x8e1   :  { %v865_v45 = vadd.f32 %v863_v43, %v855_v37  ;;  %v862_v46 = vmul.f32 0.044715, %v860_v44  ;;  %v1346_v43 = vld [vmem:[%s2541_s5 + $0x90] sm:$0xff]  ;;  %v1340_v44 = vld [vmem:[%s2541_s5 + $0x60] sm:$0xff] }
 0x8e3   :  { %v867_v47 = vmul.f32 0.7978846, %v865_v45  ;;  %v864_v48 = vadd.f32 %v862_v46, %v850_v40  ;;  %v1339_v45 = vld [vmem:[%s2541_s5 + $0x58] sm:$0xff]  ;;  %v1345_v46 = vld [vmem:[%s2541_s5 + $0x88] sm:$0xff] }
 0x8e5   :  { %2064 = vtanh.f32 %v867_v47  ;;  %v866_v49 = vmul.f32 0.7978846, %v864_v48  ;;  %v1344_v47 = vld [vmem:[%s2541_s5 + $0x80] sm:$0xff]  ;;  %v1338_v48 = vld [vmem:[%s2541_s5 + $0x50] sm:$0xff] }
 0x8e7   :  { %2066 = vtanh.f32 %v866_v49  ;;  %v1337_v49 = vld [vmem:[%s2541_s5 + $0x48] sm:$0xff] }
 0x8f2   :  { %v2065_v50 = vpop.eup %2064 }
 0x8f3   :  { %v871_v51 = vadd.f32 1.0, %v2065_v50  ;;  %v1343_v50 = vld [vmem:[%s2541_s5 + $0x78] sm:$0xff] }
 0x8f4   :  { %v2067_v52 = vpop.eup %2066 }
 0x8f5   :  { %v870_v53 = vadd.f32 1.0, %v2067_v52  ;;  %v873_v54 = vmul.f32 0.5, %v871_v51  ;;  %v1342_v51 = vld [vmem:[%s2541_s5 + $0x70] sm:$0xff]  ;;  %v1341_v52 = vld [vmem:[%s2541_s5 + $0x68] sm:$0xff] }
 0x8f7   :  { %v872_v55 = vmul.f32 0.5, %v870_v53  ;;  %v875_v57 = vmul.f32 %v873_v54, %v855_v37  ;;  %v1171_v37 = vld [vmem:[%s2541_s5 + $0x28] sm:$0xff] }
 0x8f9   :  { %v874_v56 = vmul.f32 %v872_v55, %v850_v40  ;;  %v1170_v40 = vld [vmem:[%s2543_s2] sm:$0x3]  ;;  %v1711_v55 = vld [vmem:[%s2539_s4 + $0x1b0] ss:$0 sm:$0xff] }
 0x8fb   :  { %1945 = vmatprep.mubr.msk.f32.mxu0 %vm889_vm6, %v874_v56 }
 0x8fc   :  { %1946 = vmatmul.mubr.msk.f32.vlgmr.msra.gmra.mxu0 %vm889_vm6, %v875_v57 }
 0x8fd   :  { %1952 = vmatprep.mubr.msk.f32.mxu0 %vm2076_vm7, %v2075_v19 }
 0x9bc   :  { %v1947_v60 = vpop.f32.mrf.mxu0 }
 0x9bd   :  { %v968_v62 = vadd.f32 %v1947_v60, %v1705_v59  ;;  %v1713_v60 = vld [vmem:[%s2541_s5 + $0x30] ss:$0 sm:$0xff] }
 0x9be   :  { %v962_v63 = vpop.f32.mrf.mxu0 }
 0x9bf   :  { %v963_v0 = vadd.f32 %v1705_v59, %v962_v63  ;;  %v972_v1 = vadd.f32 %v968_v62, %v767_v26 }
 0x9c1   :  { %v978_v2 = vsel %vm145_vm4, %v972_v1, 0.0  ;;  %v971_v3 = vadd.f32 %v963_v0, %v2303_v24  ;;  %v1708_v24 = vld [vmem:[%s2539_s4 + $0x180] ss:$0 sm:$0xff] }
 0x9c2   :  { %979 = vadd.xlane.f32.xlu1 %v978_v2  ;;  %v1502_v2 = vld [vmem:[%s2541_s5 + $0xe0] sm:$0xff] }
 0x9c3   :  { %v975_v4 = vsel %vm145_vm4, %v971_v3, 0.0 }
 0x9c4   :  { %976 = vadd.xlane.f32.xlu0 %v975_v4  ;;  %v1501_v4 = vld [vmem:[%s2541_s5 + $0xd8] sm:$0xff] }
 0xa4b   :  { %v980_v5 = vpop.xlane.xlu1 %979 }
 0xa4c   :  { %v982_v6 = vmul.f32 0.03125, %v980_v5  ;;  %v1500_v5 = vld [vmem:[%s2541_s5 + $0xd0] sm:$0xff] }
 0xa4d   :  { %v977_v58 = vpop.xlane.xlu0 %976 }
 0xa4e   :  { %v984_v61 = vsub.f32 %v972_v1, %v982_v6  ;;  %v981_v7 = vmul.f32 0.03125, %v977_v58  ;;  %v1499_v6 = vld [vmem:[%s2541_s5 + $0xc8] sm:$0xff]  ;;  %v1715_v58 = vld [vmem:[%s2541_s5 + $0x40] ss:$0 sm:$0xff] }
 0xa50   :  { %v983_v8 = vsub.f32 %v971_v3, %v981_v7  ;;  %v986_v9 = vmul.f32 %v984_v61, %v984_v61 }
 0xa52   :  { %v990_v10 = vsel %vm145_vm4, %v986_v9, 0.0  ;;  %v985_v11 = vmul.f32 %v983_v8, %v983_v8  ;;  %v1496_v9 = vld [vmem:[%s2541_s5 + $0xb0] sm:$0xff] }
 0xa53   :  { %991 = vadd.xlane.f32.xlu1 %v990_v10 }
 0xa54   :  { %v987_v12 = vsel %vm145_vm4, %v985_v11, 0.0  ;;  %v1495_v11 = vld [vmem:[%s2541_s5 + $0xa8] sm:$0xff] }
 0xa55   :  { %988 = vadd.xlane.f32.xlu0 %v987_v12  ;;  %v1591_v12 = vld [vmem:[%s2544_s6 + $0x38] sm:$0xff] }
 0xadc   :  { %v992_v16 = vpop.xlane.xlu1 %991 }
 0xadd   :  { %v994_v17 = vmul.f32 0.03125, %v992_v16  ;;  %v1587_v16 = vld [vmem:[%s2544_s6 + $0x18] sm:$0xff] }
 0xade   :  { %v989_v18 = vpop.xlane.xlu0 %988 }
 0xadf   :  { %v996_v20 = vadd.f32 1e-12, %v994_v17  ;;  %v993_v21 = vmul.f32 0.03125, %v989_v18  ;;  %v1586_v17 = vld [vmem:[%s2544_s6 + $0x10] sm:$0xff]  ;;  %v1585_v18 = vld [vmem:[%s2544_s6 + $0x8] sm:$0xff] }
 0xae1   :  { %2068 = vrsqrt.f32 %v996_v20  ;;  %v995_v22 = vadd.f32 1e-12, %v993_v21  ;;  %v1584_v20 = vld [vmem:[%s2544_s6] sm:$0xff] }
 0xae3   :  { %2070 = vrsqrt.f32 %v995_v22 }
 0xaee   :  { %v2069_v23 = vpop.eup %2068 }
 0xaef   :  { %v1000_v25 = vmul.f32 %v2069_v23, %v984_v61  ;;  %v1498_v61 = vld [vmem:[%s2541_s5 + $0xc0] sm:$0xff] }
 0xaf0   :  { %v2071_v26 = vpop.eup %2070 }
 0xaf1   :  { %v1006_v28 = vmul.f32 %v1708_v24, %v1000_v25  ;;  %v999_v29 = vmul.f32 %v2071_v26, %v983_v8  ;;  %v1497_v8 = vld [vmem:[%s2541_s5 + $0xb8] sm:$0xff] }
 0xaf3   :  { %v1012_v30 = vadd.f32 %v1709_v27, %v1006_v28  ;;  %v1005_v31 = vmul.f32 %v1708_v24, %v999_v29 }
 0xaf5   :  { %1949 = vmatpush3.msra.mxu0 %v1012_v30  ;;  %v1011_v32 = vadd.f32 %v1709_v27, %v1005_v31  ;;  %v1721_v27 = vld [vmem:[%s2541_s5 + $0xe8] ss:$0 sm:$0xff] }
 0xaf6   :  { %1950 = vmatprep.subr.mxu0 %v2075_v19 }
 0xaf7   :  { %1951 = vmatpush3.msra.mxu0 %v1011_v32 }
 0xaf8   :  { %1953 = vmatmul.mubr.msk.f32.vlgmr.msra.gmra.mxu0 %vm532_vm5, %v1013_v33  ;;  %1971 = vmatprep.subr.mxu0 %v2075_v19 }
 0xaf9   :  { %1973 = vmatprep.mubr.msk.f32.mxu0 %vm2076_vm7, %v2075_v19  ;;  %1972 = vmatpush3.msk.msra.mxu0 %vm64_vm0, %v1253_v35 }
 0xafa   :  { %1995 = vmatprep.subr.mxu0 %v2075_v19 }
 0xafc   :  { %1974 = vmatmul.mubr.msk.f32.vlgmr.msra.gmra.mxu0 %vm1259_vm8, %v1252_v36 }
 0xafd   :  { %2003 = vmatprep.mubr.msk.f32.mxu0 %vm2076_vm7, %v2075_v19  ;;  %1996 = vmatpush3.msra.mxu0 %v1340_v44 }
 0xafe   :  { %1997 = vmatprep.subr.mxu0 %v2075_v19 }
 0xaff   :  { %1998 = vmatpush3.msra.mxu0 %v1339_v45 }
 0xb00   :  { %1999 = vmatprep.subr.mxu0 %v2075_v19 }
 0xb01   :  { %2000 = vmatpush3.msra.mxu0 %v1338_v48 }
 0xb02   :  { %2001 = vmatprep.subr.mxu0 %v2075_v19 }
 0xb03   :  { %2002 = vmatpush3.msra.mxu0 %v1337_v49 }
 0xb04   :  { %2006 = vmatprep.subr.mxu0 %v2075_v19 }
 0xbb8   :  { %v1083_v38 = vpop.f32.mrf.mxu0 }
 0xbb9   :  { %1964 = vmatmul.mubr.msk.f32.vlgmr.msra.gmra.mxu1 %vm145_vm4, %v1083_v38 }
 0xbba   :  { %v1954_v39 = vpop.f32.mrf.mxu0  ;;  %1967 = vmatpush3.msra.mxu1 %v1171_v37  ;;  %1968 = vmatprep.mubr.msk.f32.mxu1 %vm2076_vm7, %v2075_v19 }
 0xbbb   :  { %1976 = vmatprep.subr.mxu1 %v2075_v19 }
 0xbbc   :  { %v1332_v53 = vpop.f32.mrf.mxu0 }
 0xbbd   :  { %1969 = vmatmul.mubr.msk.f32.vlgmr.msra.gmra.mxu1 %vm1177_vm9, %v1170_v40  ;;  %v1333_v7 = vadd.f32 %v1715_v58, %v1332_v53 }
 0xbbe   :  { %1992 = vmatprep.mubr.msk.f32.mxu1 %vm2076_vm7, %v2075_v19  ;;  %1977 = vmatpush3.msra.mxu1 %v1348_v41  ;;  %v1975_v54 = vpop.f32.mrf.mxu0 }
 0xbbf   :  { %1978 = vmatprep.subr.mxu1 %v2075_v19  ;;  %v1336_v10 = vmax.f32 %v1333_v7, 0.0 }
 0xbc0   :  { %1979 = vmatpush3.msra.mxu1 %v1347_v42 }
 0xbc1   :  { %1980 = vmatprep.subr.mxu1 %v2075_v19 }
 0xbc2   :  { %1981 = vmatpush3.msra.mxu1 %v1346_v43 }
 0xbc3   :  { %1982 = vmatprep.subr.mxu1 %v2075_v19 }
 0xbc4   :  { %1983 = vmatpush3.msra.mxu1 %v1345_v46 }
 0xbc5   :  { %1984 = vmatprep.subr.mxu1 %v2075_v19 }
 0xbc6   :  { %1985 = vmatpush3.msra.mxu1 %v1344_v47 }
 0xbc7   :  { %1986 = vmatprep.subr.mxu1 %v2075_v19 }
 0xbc8   :  { %1987 = vmatpush3.msra.mxu1 %v1343_v50 }
 0xbc9   :  { %1988 = vmatprep.subr.mxu1 %v2075_v19 }
 0xbca   :  { %1989 = vmatpush3.msra.mxu1 %v1342_v51 }
 0xbcb   :  { %1990 = vmatprep.subr.mxu1 %v2075_v19 }
 0xbcc   :  { %1991 = vmatpush3.msra.mxu1 %v1341_v52 }
 0xbcd   :  { %2025 = vmatprep.subr.mxu1 %v2075_v19 }
 0xc79   :  { %v1165_v56 = vpop.f32.mrf.mxu1 }
 0xc7a   :  { %v1166_v57 = vadd.f32 %v1711_v55, %v1165_v56 }
 0xc7b   :  { %v1965_v59 = vpop.f32.mrf.mxu1 }
 0xc7c   :  { %2072 = vtanh.f32 %v1166_v57 }
 0xc7d   :  { %v1247_v62 = vpop.f32.mrf.mxu1 }
 0xc7e   :  { %v1248_v63 = vadd.f32 %v1713_v60, %v1247_v62 }
 0xc7f   :  { %v1970_v0 = vpop.f32.mrf.mxu1 }
 0xc80   :  { %v1251_v1 = vmax.f32 %v1248_v63, 0.0 }
 0xc82   :  { %1993 = vmatmul.mubr.msk.f32.vlgmr.msra.gmra.mxu1 %vm889_vm6, %v1251_v1 }
 0xc83   :  { %2041 = vmatprep.mubr.msk.f32.mxu1 %vm2076_vm7, %v2075_v19  ;;  %2026 = vmatpush3.msra.mxu1 %v1591_v12 }
 0xc84   :  { %2027 = vmatprep.subr.mxu1 %v2075_v19 }
 0xc85   :  { %2028 = vmatpush3.msra.mxu1 %v1590_v13 }
 0xc86   :  { %2029 = vmatprep.subr.mxu1 %v2075_v19 }
 0xc87   :  { %2030 = vmatpush3.msra.mxu1 %v1589_v14 }
 0xc88   :  { %2031 = vmatprep.subr.mxu1 %v2075_v19 }
 0xc89   :  { %v2073_v3 = vpop.eup %2072  ;;  %2032 = vmatpush3.msra.mxu1 %v1588_v15 }
 0xc8a   :  { %2004 = vmatmul.mubr.msk.f32.vlgmr.msra.gmra.mxu0 %vm145_vm4, %v2073_v3  ;;  %2033 = vmatprep.subr.mxu1 %v2075_v19 }
 0xc8b   :  { %2007 = vmatpush3.msra.mxu0 %v1502_v2  ;;  %2022 = vmatprep.mubr.msk.f32.mxu0 %vm2076_vm7, %v2075_v19 }
 0xc8c   :  { %2008 = vmatprep.subr.mxu0 %v2075_v19  ;;  %2034 = vmatpush3.msra.mxu1 %v1587_v16 }
 0xc8d   :  { %2009 = vmatpush3.msra.mxu0 %v1501_v4  ;;  %2035 = vmatprep.subr.mxu1 %v2075_v19 }
 0xc8e   :  { %2010 = vmatprep.subr.mxu0 %v2075_v19  ;;  %2036 = vmatpush3.msra.mxu1 %v1586_v17 }
 0xc8f   :  { %2011 = vmatpush3.msra.mxu0 %v1500_v5  ;;  %2037 = vmatprep.subr.mxu1 %v2075_v19 }
 0xc90   :  { %2012 = vmatprep.subr.mxu0 %v2075_v19  ;;  %2038 = vmatpush3.msra.mxu1 %v1585_v18 }
 0xc91   :  { %2013 = vmatpush3.msra.mxu0 %v1499_v6  ;;  %2039 = vmatprep.subr.mxu1 %v2075_v19 }
 0xc92   :  { %2014 = vmatprep.subr.mxu0 %v2075_v19  ;;  %2040 = vmatpush3.msra.mxu1 %v1584_v20 }
 0xc93   :  { %2015 = vmatpush3.msra.mxu0 %v1498_v61 }
 0xc94   :  { %2016 = vmatprep.subr.mxu0 %v2075_v19 }
 0xc95   :  { %2017 = vmatpush3.msra.mxu0 %v1497_v8 }
 0xc96   :  { %2018 = vmatprep.subr.mxu0 %v2075_v19 }
 0xc97   :  { %2019 = vmatpush3.msra.mxu0 %v1496_v9 }
 0xc98   :  { %2020 = vmatprep.subr.mxu0 %v2075_v19  ;;  %v1722_v19 = vld [vmem:[%s2544_s6 + $0x40] ss:$0 sm:$0xff] }
 0xc99   :  { %2021 = vmatpush3.msra.mxu0 %v1495_v11 }
 0xc9a   :  { %2023 = vmatmul.mubr.msk.f32.vlgmr.msra.gmra.mxu0 %vm889_vm6, %v1336_v10 }
 0xd42   :  { %v1418_v21 = vpop.f32.mrf.mxu1 }
 0xd44   :  { %v1994_v22 = vpop.f32.mrf.mxu1 }
 0xd4a   :  { %v1491_v23 = vpop.f32.mrf.mxu0 }
 0xd4b   :  { %v1492_v25 = vadd.f32 %v1491_v23, %v1418_v21 }
 0xd4c   :  { %v2005_v24 = vpop.f32.mrf.mxu0 }
 0xd5a   :  { %v1572_v26 = vpop.f32.mrf.mxu0 }
 0xd5b   :  { %v1576_v28 = vadd.f32 %v1572_v26, %v1492_v25 }
 0xd5c   :  { %v2024_v29 = vpop.f32.mrf.mxu0 }
 0xd5d   :  { %v1582_v30 = vadd.f32 %v1721_v27, %v1576_v28 }
 0xd5f   :  { %v1583_v31 = vmax.f32 %v1582_v30, 0.0 }
 0xd61   :  { %2042 = vmatmul.mubr.msk.f32.vlgmr.msra.gmra.mxu1 %vm889_vm6, %v1583_v31 }
 0xe21   :  { %v1666_v32 = vpop.f32.mrf.mxu1 }
 0xe22   :  { %v1667_v33 = vadd.f32 %v1722_v19, %v1666_v32 }
 0xe23   :  { %v2043_v34 = vpop.f32.mrf.mxu1 }
 0xe24   :  { %1670 = vst [vmem:[%s2545_s7] sm:$0x3] %v1667_v33 }

</bundles_post_ra>
